<compile_context>
chip_gen: v7x
topology: tpu7x:2x2x1
jax: 0.10.0
libtpu: 0.0.40
codegen_flags: <defaults>
</compile_context>

<pallas_src>
import functools

import jax
import jax.numpy as jnp
from jax.experimental import pallas as pl
from jax.experimental.pallas import tpu as pltpu


def _round_up(x, m):
    return (x + m - 1) // m * m


def _policy_mlp_kernel(x_ref, w1_ref, b1_ref, w2_ref, b2_ref, w3_ref, b3_ref, o_ref):
    # bf16 operands feed the MXU; accumulation is f32; bias add + tanh stay f32 (VPU/EUP).
    x = x_ref[...].astype(jnp.bfloat16)

    h1 = jnp.dot(x, w1_ref[...], preferred_element_type=jnp.float32) + b1_ref[...]
    h1 = jnp.tanh(h1)

    h2 = jnp.dot(h1.astype(jnp.bfloat16), w2_ref[...],
                 preferred_element_type=jnp.float32) + b2_ref[...]
    h2 = jnp.tanh(h2)

    out = jnp.dot(h2.astype(jnp.bfloat16), w3_ref[...],
                  preferred_element_type=jnp.float32) + b3_ref[...]
    o_ref[...] = out.astype(o_ref.dtype)


@functools.partial(jax.jit, static_argnames=("batch_tile",))
def policy_forward(states, params, *, batch_tile=512):
    """Mean of the stochastic policy: MLP(states). Equivalent to the PyTorch forward()."""
    w1, b1, w2, b2, w3, b3 = params
    B, state_dim = states.shape
    h1 = w1.shape[1]
    h2 = w2.shape[1]
    action_dim = w3.shape[1]
    out_pad = _round_up(action_dim, 128)  # lane-dense output head

    # MXU operands in bf16; biases stay f32 so in-kernel add/tanh are f32.
    w1b = w1.astype(jnp.bfloat16)
    w2b = w2.astype(jnp.bfloat16)
    w3p = jnp.zeros((h2, out_pad), jnp.bfloat16).at[:, :action_dim].set(
        w3.astype(jnp.bfloat16))
    b3p = jnp.zeros((1, out_pad), jnp.float32).at[:, :action_dim].set(
        b3.astype(jnp.float32))
    b1f = b1.astype(jnp.float32)
    b2f = b2.astype(jnp.float32)

    # Effective batch tile: large for throughput, clamped to the (padded) batch so tiny-B
    # calls collapse to a single grid step instead of padding up to 512 rows.
    bt = min(_round_up(batch_tile, 8), _round_up(B, 8))
    grid = (pl.cdiv(B, bt),)

    # grid-invariant weights/biases: constant index map => loaded once, reused every step
    full = lambda shape: pl.BlockSpec(shape, lambda i: (0, 0))

    flops = 2 * B * (state_dim * h1 + h1 * h2 + h2 * out_pad)
    transcendentals = B * (h1 + h2)
    bytes_accessed = (4 * B * (state_dim + out_pad)                      # states + output (f32)
                      + 2 * (state_dim * h1 + h1 * h2 + h2 * out_pad)    # bf16 weights
                      + 4 * (h1 + h2 + out_pad))                         # f32 biases

    out = pl.pallas_call(
        _policy_mlp_kernel,
        out_shape=jax.ShapeDtypeStruct((B, out_pad), states.dtype),
        grid_spec=pltpu.PrefetchScalarGridSpec(
            num_scalar_prefetch=0,
            grid=grid,
            in_specs=[
                pl.BlockSpec((bt, state_dim), lambda i: (i, 0)),  # states tile
                full((state_dim, h1)),
                full((1, h1)),
                full((h1, h2)),
                full((1, h2)),
                full((h2, out_pad)),
                full((1, out_pad)),
            ],
            out_specs=pl.BlockSpec((bt, out_pad), lambda i: (i, 0)),
        ),
        compiler_params=pltpu.CompilerParams(
            dimension_semantics=("parallel",),
        ),
        cost_estimate=pl.CostEstimate(
            flops=flops,
            transcendentals=transcendentals,
            bytes_accessed=bytes_accessed,
        ),
    )(states, w1b, b1f, w2b, b2f, w3p, b3p)

    return out[:, :action_dim]


def init_policy_params(key, state_dim, action_dim, hidden_units=(128, 128)):
    """Deterministic synthetic init (PyTorch-Linear-style uniform fan-in bounds)."""
    dims = (state_dim,) + tuple(hidden_units) + (action_dim,)
    params = []
    keys = jax.random.split(key, 2 * (len(dims) - 1))
    for li, (din, dout) in enumerate(zip(dims[:-1], dims[1:])):
        bound = 1.0 / jnp.sqrt(jnp.float32(din))
        w = jax.random.uniform(keys[2 * li], (din, dout), jnp.float32, -bound, bound)
        b = jax.random.uniform(keys[2 * li + 1], (1, dout), jnp.float32, -bound, bound)
        params += [w, b]
    # log_stds parameter exists in the module but is unused in forward()
    log_stds = jnp.zeros((1, action_dim), jnp.float32)
    return tuple(params), log_stds


def reference_forward(states, params):
    w1, b1, w2, b2, w3, b3 = params
    h = jnp.tanh(states @ w1 + b1)
    h = jnp.tanh(h @ w2 + b2)
    return h @ w3 + b3


if __name__ == "__main__":
    key = jax.random.PRNGKey(0)
    k_x, k_p = jax.random.split(key)

    batch, state_dim, action_dim = 8, 16, 8
    hidden_units = (128, 128)

    states = jax.random.normal(k_x, (batch, state_dim), jnp.float32)
    params, log_stds = init_policy_params(k_p, state_dim, action_dim, hidden_units)

    # small-batch path (single grid step)
    actions = policy_forward(states, params, batch_tile=512)
    actions = jax.block_until_ready(actions)
    ref = reference_forward(states, params)
    assert actions.shape == (batch, action_dim)
    # bf16 MXU operands with f32 accumulation -> bf16-level tolerance vs f32 reference
    assert jnp.allclose(actions, ref, atol=2e-2, rtol=2e-2)

    # large-batch path (multi-step grid with a partial trailing block)
    big_B = 1040
    states_big = jax.random.normal(jax.random.PRNGKey(1), (big_B, state_dim), jnp.float32)
    actions_big = jax.block_until_ready(policy_forward(states_big, params, batch_tile=512))
    ref_big = reference_forward(states_big, params)
    assert actions_big.shape == (big_B, action_dim)
    assert jnp.allclose(actions_big, ref_big, atol=2e-2, rtol=2e-2)

    # TODO(synk): sample()/evaluate_log_pi() (reparameterize / Gaussian log-prob) are not
    # part of forward(); log_stds is initialized but unused here, matching the PyTorch module.
    print("KERNEL_OK")
</pallas_src>

<mosaic_0001>
module attributes {stable_mosaic.version = 11 : i64} {
  func.func @_policy_mlp_kernel(%arg0: i32, %arg1: memref<8x16xf32, #tpu.memory_space<vmem>>, %arg2: memref<16x128xbf16, #tpu.memory_space<vmem>>, %arg3: memref<1x128xf32, #tpu.memory_space<vmem>>, %arg4: memref<128x128xbf16, #tpu.memory_space<vmem>>, %arg5: memref<1x128xf32, #tpu.memory_space<vmem>>, %arg6: memref<128x128xbf16, #tpu.memory_space<vmem>>, %arg7: memref<1x128xf32, #tpu.memory_space<vmem>>, %arg8: memref<8x128xf32, #tpu.memory_space<vmem>>) attributes {dimension_semantics = [#tpu.dimension_semantics<parallel>], iteration_bounds = array<i64: 1>, scalar_prefetch = 0 : i64, scratch_operands = 0 : i64, tpu.core_type = #tpu.core_type<tc>, window_params = [{transform_indices = @transform_0, window_bounds = array<i64: 8, 16>}, {pipeline_mode = #tpu.pipeline_mode<synchronous>, transform_indices = @transform_1, window_bounds = array<i64: 16, 128>}, {pipeline_mode = #tpu.pipeline_mode<synchronous>, transform_indices = @transform_2, window_bounds = array<i64: 1, 128>}, {pipeline_mode = #tpu.pipeline_mode<synchronous>, transform_indices = @transform_3, window_bounds = array<i64: 128, 128>}, {pipeline_mode = #tpu.pipeline_mode<synchronous>, transform_indices = @transform_4, window_bounds = array<i64: 1, 128>}, {pipeline_mode = #tpu.pipeline_mode<synchronous>, transform_indices = @transform_5, window_bounds = array<i64: 128, 128>}, {pipeline_mode = #tpu.pipeline_mode<synchronous>, transform_indices = @transform_6, window_bounds = array<i64: 1, 128>}, {transform_indices = @transform_7, window_bounds = array<i64: 8, 128>}]} {
    %c0 = arith.constant 0 : index
    %c0_0 = arith.constant 0 : index
    %0 = vector.load %arg1[%c0, %c0_0] : memref<8x16xf32, #tpu.memory_space<vmem>>, vector<8x16xf32>
    %1 = arith.truncf %0 : vector<8x16xf32> to vector<8x16xbf16>
    %c0_1 = arith.constant 0 : index
    %c0_2 = arith.constant 0 : index
    %2 = vector.load %arg2[%c0_1, %c0_2] : memref<16x128xbf16, #tpu.memory_space<vmem>>, vector<16x128xbf16>
    %cst = arith.constant dense<0.000000e+00> : vector<8x128xf32>
    %3 = tpu.matmul %1, %2, %cst {dimension_numbers = #tpu.dot_dimension_numbers<[1], [0], [0], [1], [0, 0, 1, 1], [], []>} : vector<8x16xbf16>, vector<16x128xbf16>, vector<8x128xf32> -> vector<8x128xf32>
    %c0_3 = arith.constant 0 : index
    %c0_4 = arith.constant 0 : index
    %4 = vector.load %arg3[%c0_3, %c0_4] : memref<1x128xf32, #tpu.memory_space<vmem>>, vector<1x128xf32>
    %5 = vector.broadcast %4 : vector<1x128xf32> to vector<8x128xf32>
    %6 = arith.addf %3, %5 : vector<8x128xf32>
    %7 = math.tanh %6 : vector<8x128xf32>
    %8 = arith.truncf %7 : vector<8x128xf32> to vector<8x128xbf16>
    %c0_5 = arith.constant 0 : index
    %c0_6 = arith.constant 0 : index
    %9 = vector.load %arg4[%c0_5, %c0_6] : memref<128x128xbf16, #tpu.memory_space<vmem>>, vector<128x128xbf16>
    %cst_7 = arith.constant dense<0.000000e+00> : vector<8x128xf32>
    %10 = tpu.matmul %8, %9, %cst_7 {dimension_numbers = #tpu.dot_dimension_numbers<[1], [0], [0], [1], [0, 0, 1, 1], [], []>} : vector<8x128xbf16>, vector<128x128xbf16>, vector<8x128xf32> -> vector<8x128xf32>
    %c0_8 = arith.constant 0 : index
    %c0_9 = arith.constant 0 : index
    %11 = vector.load %arg5[%c0_8, %c0_9] : memref<1x128xf32, #tpu.memory_space<vmem>>, vector<1x128xf32>
    %12 = vector.broadcast %11 : vector<1x128xf32> to vector<8x128xf32>
    %13 = arith.addf %10, %12 : vector<8x128xf32>
    %14 = math.tanh %13 : vector<8x128xf32>
    %15 = arith.truncf %14 : vector<8x128xf32> to vector<8x128xbf16>
    %c0_10 = arith.constant 0 : index
    %c0_11 = arith.constant 0 : index
    %16 = vector.load %arg6[%c0_10, %c0_11] : memref<128x128xbf16, #tpu.memory_space<vmem>>, vector<128x128xbf16>
    %cst_12 = arith.constant dense<0.000000e+00> : vector<8x128xf32>
    %17 = tpu.matmul %15, %16, %cst_12 {dimension_numbers = #tpu.dot_dimension_numbers<[1], [0], [0], [1], [0, 0, 1, 1], [], []>} : vector<8x128xbf16>, vector<128x128xbf16>, vector<8x128xf32> -> vector<8x128xf32>
    %c0_13 = arith.constant 0 : index
    %c0_14 = arith.constant 0 : index
    %18 = vector.load %arg7[%c0_13, %c0_14] : memref<1x128xf32, #tpu.memory_space<vmem>>, vector<1x128xf32>
    %19 = vector.broadcast %18 : vector<1x128xf32> to vector<8x128xf32>
    %20 = arith.addf %17, %19 : vector<8x128xf32>
    %c0_15 = arith.constant 0 : index
    %c0_16 = arith.constant 0 : index
    %21 = vector.load %arg8[%c0_15, %c0_16] : memref<8x128xf32, #tpu.memory_space<vmem>>, vector<8x128xf32>
    tpu.vector_store %arg8[%c0_15, %c0_16], %20 {strides = array<i32>} : memref<8x128xf32, #tpu.memory_space<vmem>>, vector<8x128xf32>,
    return
  }
  func.func @transform_0(%arg0: i32) -> (i32, i32) {
    %c0_i32 = arith.constant 0 : i32
    %c0_i32_0 = arith.constant 0 : i32
    return %arg0, %c0_i32 : i32, i32
  }
  func.func @transform_1(%arg0: i32) -> (i32, i32) {
    %c0_i32 = arith.constant 0 : i32
    %c0_i32_0 = arith.constant 0 : i32
    %c0_i32_1 = arith.constant 0 : i32
    return %c0_i32, %c0_i32_0 : i32, i32
  }
  func.func @transform_2(%arg0: i32) -> (i32, i32) {
    %c0_i32 = arith.constant 0 : i32
    %c0_i32_0 = arith.constant 0 : i32
    %c0_i32_1 = arith.constant 0 : i32
    return %c0_i32, %c0_i32_0 : i32, i32
  }
  func.func @transform_3(%arg0: i32) -> (i32, i32) {
    %c0_i32 = arith.constant 0 : i32
    %c0_i32_0 = arith.constant 0 : i32
    %c0_i32_1 = arith.constant 0 : i32
    return %c0_i32, %c0_i32_0 : i32, i32
  }
  func.func @transform_4(%arg0: i32) -> (i32, i32) {
    %c0_i32 = arith.constant 0 : i32
    %c0_i32_0 = arith.constant 0 : i32
    %c0_i32_1 = arith.constant 0 : i32
    return %c0_i32, %c0_i32_0 : i32, i32
  }
  func.func @transform_5(%arg0: i32) -> (i32, i32) {
    %c0_i32 = arith.constant 0 : i32
    %c0_i32_0 = arith.constant 0 : i32
    %c0_i32_1 = arith.constant 0 : i32
    return %c0_i32, %c0_i32_0 : i32, i32
  }
  func.func @transform_6(%arg0: i32) -> (i32, i32) {
    %c0_i32 = arith.constant 0 : i32
    %c0_i32_0 = arith.constant 0 : i32
    %c0_i32_1 = arith.constant 0 : i32
    return %c0_i32, %c0_i32_0 : i32, i32
  }
  func.func @transform_7(%arg0: i32) -> (i32, i32) {
    %c0_i32 = arith.constant 0 : i32
    %c0_i32_0 = arith.constant 0 : i32
    return %arg0, %c0_i32 : i32, i32
  }
}

</mosaic_0001>

<bundles_post_ra>
// kernel: policy_forward.1
= control target key start
LH: loop header
LB: loop body
LE: loop exit
PB: predicated region body
PF: predicated region fallthrough
CT: control target
= control target key end

     0   :  { %v465_v1 = vmov 0.0   ;;  %vm45_vm0 = vcmask 130048   ;;  %vm466_vm1 = vmmov 0   ;;  %s603_s0 = inlined_call_operand.vmem [shape: f32[8,16], index: 0, kind: input, shape index: {}]   ;;  %s604_s1 = inlined_call_operand.vmem [shape: bf16[16,128], index: 1, kind: input, shape index: {}]   ;;  %s605_s2 = inlined_call_operand.vmem [shape: f32[1,128], index: 2, kind: input, shape index: {}]   ;;  %s606_s3 = inlined_call_operand.vmem [shape: bf16[128,128], index: 3, kind: input, shape index: {}]   ;;  %s607_s4 = inlined_call_operand.vmem [shape: f32[1,128], index: 4, kind: input, shape index: {}]   ;;  %s608_s5 = inlined_call_operand.vmem [shape: bf16[128,128], index: 5, kind: input, shape index: {}]   ;;  %s609_s6 = inlined_call_operand.vmem [shape: f32[1,128], index: 6, kind: input, shape index: {}]   ;;  %s610_s7 = inlined_call_operand.hbm [shape: f32[8,128], index: 7, kind: output, shape index: {}]  }
   0x1   :  { %v420_v0 = vld [vmem:[%s604_s1] sm:$0xff]   ;;  %371 = vmatprep.subr.bf16.mxu0 %v465_v1  ;;  %377 = vmatprep.subr.bf16.mxu1 %v465_v1  ;;  %v422_v5 = vld [vmem:[%s606_s3 + $0x8] sm:$0xff]   ;;  %v423_v6 = vld [vmem:[%s606_s3 + $0x10] sm:$0xff]  }
   0x2   :  { %v28_v2 = vld [vmem:[%s603_s0] sm:$0xff]  ;;  %372 = vmatpush3.bf16.msra.mxu0 %v420_v0  ;;  %373 = vmatprep.mubr.msk.bf16.mxu0 %vm466_vm1, %v465_v1  ;;  %v424_v7 = vld [vmem:[%s606_s3 + $0x18] sm:$0xff]  }
   0x3   :  { %v421_v3 = vld [vmem:[%s606_s3] sm:$0xff]   ;;  %v29_v4 = vpack.c.bf16 %v28_v2, %v28_v2  ;;  %393 = vmatprep.mubr.msk.bf16.mxu1 %vm466_vm1, %v465_v1  ;;  %397 = vmatprep.subr.bf16.mxu0 %v465_v1 }
   0x4   :  { %378 = vmatpush3.bf16.msra.mxu1 %v421_v3 }
   0x5   :  { %379 = vmatprep.subr.bf16.mxu1 %v465_v1  ;;  %374 = vmatmul.mubr.msk.bf16.vlgmr.msra.gmra.mrb[0].mxu0 %vm45_vm0, %v29_v4 }
   0x6   :  { %413 = vmatprep.mubr.msk.bf16.mxu0 %vm466_vm1, %v465_v1 }
   0x8   :  { %380 = vmatpush3.bf16.msra.mxu1 %v422_v5 }
   0x9   :  { %381 = vmatprep.subr.bf16.mxu1 %v465_v1 }
   0xc   :  { %382 = vmatpush3.bf16.msra.mxu1 %v423_v6 }
   0xd   :  { %383 = vmatprep.subr.bf16.mxu1 %v465_v1 }
   0xe   :  { %12 = vsyncpa [#allocation3], 0  ;;  %v425_v8 = vld [vmem:[%s606_s3 + $0x20] sm:$0xff]   ;;  %v426_v9 = vld [vmem:[%s606_s3 + $0x28] sm:$0xff]   ;;  %s467_s14 = smov [#allocation2]  }
   0xf   :  { %v427_v10 = vld [vmem:[%s606_s3 + $0x30] sm:$0xff]   ;;  %v428_v11 = vld [vmem:[%s606_s3 + $0x38] sm:$0xff]   ;;  %v429_v12 = vld [vmem:[%s608_s5] sm:$0xff]  }
  0x10   :  { %384 = vmatpush3.bf16.msra.mxu1 %v424_v7  ;;  %398 = vmatpush3.bf16.msra.mxu0 %v429_v12  ;;  %v430_v13 = vld [vmem:[%s608_s5 + $0x8] sm:$0xff]   ;;  %v431_v14 = vld [vmem:[%s608_s5 + $0x10] sm:$0xff]   ;;  %v432_v15 = vld [vmem:[%s608_s5 + $0x18] sm:$0xff]  }
  0x11   :  { %385 = vmatprep.subr.bf16.mxu1 %v465_v1  ;;  %399 = vmatprep.subr.bf16.mxu0 %v465_v1  ;;  %v330_v16 = vld [vmem:[%s605_s2] ss:$0 sm:$0xff]  ;;  %v434_v25 = vld [vmem:[%s608_s5 + $0x28] sm:$0xff]   ;;  %v435_v26 = vld [vmem:[%s608_s5 + $0x30] sm:$0xff]  }
  0x12   :  { %v433_v24 = vld [vmem:[%s608_s5 + $0x20] sm:$0xff]   ;;  %v436_v27 = vld [vmem:[%s608_s5 + $0x38] sm:$0xff]   ;;  %s322_s5 = sshll.u32 %s467_s14, 4  ;;  %s323_s5 = int_to_ptr.vmem [resolvable:$true] %s322_s5 }
  0x13   :  { %v333_v28 = vld [vmem:[%s607_s4] ss:$0 sm:$0xff]  ;;  %s441_s4 = scalar_lea.vmem %s323_s5, 128  ;;  %p446_p1 = scmp.lt.s32.totalorder %s323_s5, %s323_s5 }
  0x14   :  { %386 = vmatpush3.bf16.msra.mxu1 %v425_v8  ;;  %400 = vmatpush3.bf16.msra.mxu0 %v430_v13  ;;  %v342_v36 = vld [vmem:[%s609_s6] ss:$0 sm:$0xff]  ;;  %p442_p0 = scmp.ne.s32.totalorder %s323_s5, %s441_s4  ;;  %p447_p2 = scmp.lt.s32.totalorder %s441_s4, %s441_s4 }
  0x15   :  { %387 = vmatprep.subr.bf16.mxu1 %v465_v1  ;;  %401 = vmatprep.subr.bf16.mxu0 %v465_v1 }
  0x16   :  { %p448_p3 = por %p447_p2, %p446_p1 }
  0x18   :  { %388 = vmatpush3.bf16.msra.mxu1 %v426_v9  ;;  %402 = vmatpush3.bf16.msra.mxu0 %v431_v14  ;;  %p449_p4 = pnand %p448_p3, %p442_p0 }
  0x19   :  { %389 = vmatprep.subr.bf16.mxu1 %v465_v1  ;;  %403 = vmatprep.subr.bf16.mxu0 %v465_v1 }
  0x1c   :  { %390 = vmatpush3.bf16.msra.mxu1 %v427_v10  ;;  %404 = vmatpush3.bf16.msra.mxu0 %v432_v15 }
  0x1d   :  { %391 = vmatprep.subr.bf16.mxu1 %v465_v1  ;;  %405 = vmatprep.subr.bf16.mxu0 %v465_v1 }
  0x20   :  { %392 = vmatpush3.bf16.msra.mxu1 %v428_v11  ;;  %406 = vmatpush3.bf16.msra.mxu0 %v433_v24 }
  0x21   :  { %407 = vmatprep.subr.bf16.mxu0 %v465_v1 }
  0x24   :  { %408 = vmatpush3.bf16.msra.mxu0 %v434_v25 }
  0x25   :  { %409 = vmatprep.subr.bf16.mxu0 %v465_v1 }
  0x28   :  { %410 = vmatpush3.bf16.msra.mxu0 %v435_v26 }
  0x29   :  { %411 = vmatprep.subr.bf16.mxu0 %v465_v1 }
  0x2c   :  { %412 = vmatpush3.bf16.msra.mxu0 %v436_v27 }
  0xd8   :  { %v83_v17 = vpop.f32.mrb[0].mxu0 }
  0xd9   :  { %v84_v18 = vadd.f32 %v330_v16, %v83_v17  ;;  %v375_v19 = vpop.f32.mrb[1].mxu0 }
  0xda   :  { %v86_v20 = vpop.f32.mrb[2].mxu0 }
  0xdb   :  { %437 = vtanh.f32 %v84_v18  ;;  %v376_v21 = vpop.f32.mrb[3].mxu0 }
  0xe5   :  { %v438_v22 = vpop.eup %437 }
  0xe6   :  { %v90_v23 = vpack.c.bf16 %v438_v22, %v438_v22 }
  0xe8   :  { %394 = vmatmul.mubr.bf16.vlgmr.msra.gmra.mrb[0].mxu1 %v90_v23 }
 0x1bb   :  { %v196_v29 = vpop.f32.mrb[0].mxu1 }
 0x1bc   :  { %v197_v30 = vadd.f32 %v333_v28, %v196_v29  ;;  %v395_v31 = vpop.f32.mrb[1].mxu1 }
 0x1bd   :  { %v199_v32 = vpop.f32.mrb[2].mxu1 }
 0x1be   :  { %439 = vtanh.f32 %v197_v30  ;;  %v396_v33 = vpop.f32.mrb[3].mxu1 }
 0x1c8   :  { %v440_v34 = vpop.eup %439 }
 0x1c9   :  { %v203_v35 = vpack.c.bf16 %v440_v34, %v440_v34 }
 0x1cb   :  { %414 = vmatmul.mubr.bf16.vlgmr.msra.gmra.mrb[4].mxu0 %v203_v35 }
 0x29e   :  { %v309_v37 = vpop.f32.mrb[4].mxu0 }
 0x29f   :  { %v310_v38 = vadd.f32 %v342_v36, %v309_v37  ;;  %v415_v39 = vpop.f32.mrb[5].mxu0 }
 0x2a0   :  { %v312_v40 = vpop.f32.mrb[6].mxu0 }
 0x2a1   :  { %315 = vst [vmem:[#allocation2] sm:$0xff] %v310_v38  ;;  %v416_v41 = vpop.f32.mrb[7].mxu0 }
 0x2a2   :  { %452 = shalt.err (!%p449_p4)
}
 0x2a3   :  { %s453_s6 = scalar_lea.hbm %s610_s7, 128 }
 0x2a4   :  { %p454_p5 = scmp.ne.s32.totalorder %s610_s7, %s453_s6  ;;  %p457_p6 = scmp.lt.u32.totalorder %s453_s6, %s610_s7 }
 0x2a6   :  { %p459_p7 = pnand %p457_p6, %p454_p5 }
 0x2a8   :  { %462 = shalt.err (!%p459_p7)
}
 0x2a9   :  { %325 = dma.vmem_to_hbm [thread:$0]  %s323_s5, 128, %s610_s7, [#allocation3]  }
 0x2aa   :  { %463 = dma.done.wait [#allocation3], 128  }
 0x2ab   :  { %464 = vsyncadd [#allocation3], 4294967168 }
 0x2ac   :  { %329 = vsyncpa [#allocation3], 1 }

</bundles_post_ra>
